<compile_context>
chip_gen: v5e
topology: v5e:2x2
jax: 0.10.0
libtpu: 0.0.40
codegen_flags: <defaults>
</compile_context>

<pallas_src>
import functools

import jax
import jax.numpy as jnp
from jax.experimental import pallas as pl
from jax.experimental.pallas import tpu as pltpu

SMOOTHING = 0.1


def _round_up(v, m):
    return ((v + m - 1) // m) * m


def _cdiv(a, b):
    return -(-a // b)


def _pick_class_tile(c, block_c):
    """Lane-dense class tile (multiple of 128).

    Prefer a tile that divides C exactly (no padding, padded-class mask
    compiles out).  Otherwise pick a near-balanced tile so HBM padding waste
    is at most ~127 columns per tile row instead of up to a full tile.
    """
    cap = min(_round_up(block_c, 128), _round_up(c, 128))   # multiple of 128
    if c % 128 == 0:
        d = cap
        while d >= max(128, cap // 2):
            if c % d == 0:
                return d                                    # exact divisor
            d -= 128
    ntiles = _cdiv(c, cap)
    return _round_up(_cdiv(c, ntiles), 128)                 # near-balanced


def _make_kernel(num_classes, smoothing, tile_c, padded_c):
    """Kernel closure over static problem constants."""
    smooth_val = smoothing / max(num_classes - 1, 1)   # guard degenerate C==1
    confidence = 1.0 - smoothing

    def kernel(pred_ref, tgt_ref, out_ref, m_sc, l_sc, a_sc):
        k = pl.program_id(1)
        nk = pl.num_programs(1)

        @pl.when(k == 0)
        def _init():
            m_sc[...] = jnp.full(m_sc.shape, -jnp.inf, jnp.float32)
            l_sc[...] = jnp.zeros_like(l_sc)
            a_sc[...] = jnp.zeros_like(a_sc)

        x = pred_ref[...].astype(jnp.float32)        # (tb, tc), upcast in-kernel

        # (1, tc) iota built once; the k*tile_c shift moves to the scalar /
        # (tb,1) side instead of a full (tb, tc) int32 temporary.
        col = jax.lax.broadcasted_iota(jnp.int32, (1, tile_c), 1)

        if padded_c != num_classes:                  # static: only when padded
            # Only the LSE needs the -inf mask; padded columns are zero-filled
            # in HBM so they contribute exactly 0 to the weighted sum below.
            x_lse = jnp.where(col < (num_classes - k * tile_c), x, -jnp.inf)
        else:
            x_lse = x

        # ---- online logsumexp over the class axis ----
        m_tile = jnp.max(x_lse, axis=-1, keepdims=True)
        m_new = jnp.maximum(m_sc[...], m_tile)
        alpha = jnp.exp(m_sc[...] - m_new)
        l_sc[...] = alpha * l_sc[...] + jnp.sum(jnp.exp(x_lse - m_new),
                                                axis=-1, keepdims=True)
        m_sc[...] = m_new

        # ---- fused weighted running sum:  sum_c(true_dist_c * x_c) ----
        onehot = col == (tgt_ref[...] - k * tile_c)            # (tb, tc)
        w = jnp.where(onehot, confidence, smooth_val)
        a_sc[...] += jnp.sum(x * w, axis=-1, keepdims=True)

        @pl.when(k == nk - 1)
        def _finalize():
            lse = m_sc[...] + jnp.log(l_sc[...])
            out_ref[...] = (lse - a_sc[...]).astype(out_ref.dtype)

    return kernel


@functools.partial(jax.jit, static_argnames=("smoothing", "block_n", "block_c"))
def label_smoothing_loss(pred, target, *, smoothing=SMOOTHING,
                         block_n=256, block_c=4096):
    """pred: (N, C) float logits; target: (N,) int labels. Returns scalar f32 loss."""
    n, c = pred.shape
    tgt = target.astype(jnp.int32).reshape(n, 1)

    # Sublane-aligned batch tile, near-balanced; guarantee >=2 batch blocks
    # when N >= 16 so the "parallel" axis can shard across v7x's 2 TCs.
    tb_cap = min(_round_up(block_n, 8), _round_up(n, 8))
    nb = _cdiv(n, tb_cap)
    if nb < 2 and n >= 16:
        nb = 2
    tb = _round_up(_cdiv(n, nb), 8)
    n_pad = nb * tb

    # Lane-dense class tile, exact-divisor preferred (mask compiles out).
    tc = _pick_class_tile(c, block_c)
    c_pad = _round_up(c, tc)

    if (n_pad, c_pad) != (n, c):
        pred = jnp.pad(pred, ((0, n_pad - n), (0, c_pad - c)))
        tgt = jnp.pad(tgt, ((0, n_pad - n), (0, 0)))

    grid = (n_pad // tb, c_pad // tc)
    kernel = _make_kernel(c, smoothing, tc, c_pad)

    cost = pl.CostEstimate(
        flops=6 * n_pad * c_pad,
        transcendentals=n_pad * c_pad,
        bytes_accessed=n_pad * c_pad * pred.dtype.itemsize + 2 * n_pad * 4,
    )

    per_row = pl.pallas_call(
        kernel,
        out_shape=jax.ShapeDtypeStruct((n_pad, 1), jnp.float32),
        grid_spec=pltpu.PrefetchScalarGridSpec(
            num_scalar_prefetch=0,
            grid=grid,
            in_specs=[
                pl.BlockSpec((tb, tc), lambda i, k: (i, k)),   # logits tile
                pl.BlockSpec((tb, 1), lambda i, k: (i, 0)),    # target column
            ],
            out_specs=pl.BlockSpec((tb, 1), lambda i, k: (i, 0)),
            scratch_shapes=[pltpu.VMEM((tb, 1), jnp.float32)] * 3,  # m, l, acc
        ),
        compiler_params=pltpu.CompilerParams(
            dimension_semantics=("parallel", "arbitrary"),
        ),
        cost_estimate=cost,
    )(pred, tgt)

    # Final mean over the *real* rows (global N), trivial O(N) reduce in XLA.
    return jnp.mean(per_row[:n, 0])


def _reference(pred, target, smoothing=SMOOTHING):
    n, c = pred.shape
    logp = jax.nn.log_softmax(pred.astype(jnp.float32), axis=-1)
    true_dist = jnp.full((n, c), smoothing / (c - 1), dtype=jnp.float32)
    true_dist = true_dist.at[jnp.arange(n), target].set(1.0 - smoothing)
    return jnp.mean(jnp.sum(-true_dist * logp, axis=-1))


if __name__ == "__main__":
    key = jax.random.PRNGKey(0)
    k1, k2, k3, k4 = jax.random.split(key, 4)

    # Case 1: aligned shapes, small tiles -> (2, 2) grid exercises the online
    # logsumexp reduction across class tiles, the fused weighted accumulator
    # and the parallel batch axis; class tile divides C, so no masking.
    N1, C1 = 16, 256
    pred1 = jax.random.normal(k1, (N1, C1), dtype=jnp.float32)
    tgt1 = jax.random.randint(k2, (N1,), 0, C1, dtype=jnp.int32)
    loss1 = label_smoothing_loss(pred1, tgt1, block_n=8, block_c=128)
    jax.block_until_ready(loss1)
    ref1 = _reference(pred1, tgt1)
    assert jnp.allclose(loss1, ref1, rtol=1e-5, atol=1e-5), (loss1, ref1)

    # Case 2: unaligned shapes + bf16 logits -> exercises row/class padding,
    # the LSE-only -inf mask and the bf16-in / f32-compute path.
    N2, C2 = 10, 200
    pred2 = jax.random.normal(k3, (N2, C2), dtype=jnp.bfloat16)
    tgt2 = jax.random.randint(k4, (N2,), 0, C2, dtype=jnp.int32)
    loss2 = label_smoothing_loss(pred2, tgt2, block_n=8, block_c=128)
    jax.block_until_ready(loss2)
    ref2 = _reference(pred2, tgt2)
    assert jnp.allclose(loss2, ref2, rtol=1e-4, atol=1e-4), (loss2, ref2)

    # Case 3: default tile config (single class tile, 2 batch blocks).
    N3, C3 = 48, 512
    pred3 = jax.random.normal(k1, (N3, C3), dtype=jnp.float32)
    tgt3 = jax.random.randint(k2, (N3,), 0, C3, dtype=jnp.int32)
    loss3 = label_smoothing_loss(pred3, tgt3)
    jax.block_until_ready(loss3)
    ref3 = _reference(pred3, tgt3)
    assert jnp.allclose(loss3, ref3, rtol=1e-5, atol=1e-5), (loss3, ref3)

    print("KERNEL_OK")
</pallas_src>

<mosaic_0001>
module attributes {stable_mosaic.version = 11 : i64} {
  func.func @kernel(%arg0: i32, %arg1: i32, %arg2: memref<8x128xf32, #tpu.memory_space<vmem>>, %arg3: memref<8x1xi32, #tpu.memory_space<vmem>>, %arg4: memref<8x1xf32, #tpu.memory_space<vmem>>, %arg5: memref<8x1xf32, #tpu.memory_space<vmem>>, %arg6: memref<8x1xf32, #tpu.memory_space<vmem>>, %arg7: memref<8x1xf32, #tpu.memory_space<vmem>>) attributes {dimension_semantics = [#tpu.dimension_semantics<parallel>, #tpu.dimension_semantics<arbitrary>], iteration_bounds = array<i64: 2, 2>, scalar_prefetch = 0 : i64, scratch_operands = 3 : i64, tpu.core_type = #tpu.core_type<tc>, window_params = [{transform_indices = @transform_0, window_bounds = array<i64: 8, 128>}, {transform_indices = @transform_1, window_bounds = array<i64: 8, 1>}, {transform_indices = @transform_2, window_bounds = array<i64: 8, 1>}]} {
    %c0_i32 = arith.constant 0 : i32
    %0 = arith.cmpi eq, %arg1, %c0_i32 : i32
    %1 = arith.extui %0 : i1 to i32
    %c0_i32_0 = arith.constant 0 : i32
    %2 = arith.cmpi ne, %1, %c0_i32_0 : i32
    scf.if %2 {
      %cst_23 = arith.constant 0xFF800000 : f32
      %41 = vector.broadcast %cst_23 : f32 to vector<8x1xf32>
      %c0_24 = arith.constant 0 : index
      %c0_25 = arith.constant 0 : index
      %42 = vector.load %arg5[%c0_24, %c0_25] : memref<8x1xf32, #tpu.memory_space<vmem>>, vector<8x1xf32>
      tpu.vector_store %arg5[%c0_24, %c0_25], %41 {strides = array<i32>} : memref<8x1xf32, #tpu.memory_space<vmem>>, vector<8x1xf32>,
      %cst_26 = arith.constant 0.000000e+00 : f32
      %43 = vector.broadcast %cst_26 : f32 to vector<8x1xf32>
      %c0_27 = arith.constant 0 : index
      %c0_28 = arith.constant 0 : index
      %44 = vector.load %arg6[%c0_27, %c0_28] : memref<8x1xf32, #tpu.memory_space<vmem>>, vector<8x1xf32>
      tpu.vector_store %arg6[%c0_27, %c0_28], %43 {strides = array<i32>} : memref<8x1xf32, #tpu.memory_space<vmem>>, vector<8x1xf32>,
      %cst_29 = arith.constant 0.000000e+00 : f32
      %45 = vector.broadcast %cst_29 : f32 to vector<8x1xf32>
      %c0_30 = arith.constant 0 : index
      %c0_31 = arith.constant 0 : index
      %46 = vector.load %arg7[%c0_30, %c0_31] : memref<8x1xf32, #tpu.memory_space<vmem>>, vector<8x1xf32>
      tpu.vector_store %arg7[%c0_30, %c0_31], %45 {strides = array<i32>} : memref<8x1xf32, #tpu.memory_space<vmem>>, vector<8x1xf32>,
    } else {
    }
    %c0 = arith.constant 0 : index
    %c0_1 = arith.constant 0 : index
    %3 = vector.load %arg2[%c0, %c0_1] : memref<8x128xf32, #tpu.memory_space<vmem>>, vector<8x128xf32>
    %4 = tpu.iota {dimensions = array<i32: 1>} : vector<1x128xi32>
    %cst = arith.constant dense<0xFF800000> : vector<8xf32>
    %5 = vector.multi_reduction <maximumf>, %3, %cst [1] : vector<8x128xf32> to vector<8xf32>
    %6 = vector.shape_cast %5 : vector<8xf32> to vector<8x1xf32>
    %c0_2 = arith.constant 0 : index
    %c0_3 = arith.constant 0 : index
    %7 = vector.load %arg5[%c0_2, %c0_3] : memref<8x1xf32, #tpu.memory_space<vmem>>, vector<8x1xf32>
    %8 = arith.maximumf %7, %6 : vector<8x1xf32>
    %c0_4 = arith.constant 0 : index
    %c0_5 = arith.constant 0 : index
    %9 = vector.load %arg5[%c0_4, %c0_5] : memref<8x1xf32, #tpu.memory_space<vmem>>, vector<8x1xf32>
    %10 = arith.subf %9, %8 : vector<8x1xf32>
    %11 = math.exp %10 : vector<8x1xf32>
    %c0_6 = arith.constant 0 : index
    %c0_7 = arith.constant 0 : index
    %12 = vector.load %arg6[%c0_6, %c0_7] : memref<8x1xf32, #tpu.memory_space<vmem>>, vector<8x1xf32>
    %13 = arith.mulf %11, %12 : vector<8x1xf32>
    %14 = vector.broadcast %8 : vector<8x1xf32> to vector<8x128xf32>
    %15 = arith.subf %3, %14 : vector<8x128xf32>
    %16 = math.exp %15 : vector<8x128xf32>
    %cst_8 = arith.constant dense<0.000000e+00> : vector<8xf32>
    %17 = vector.multi_reduction <add>, %16, %cst_8 [1] : vector<8x128xf32> to vector<8xf32>
    %18 = vector.shape_cast %17 : vector<8xf32> to vector<8x1xf32>
    %19 = arith.addf %13, %18 : vector<8x1xf32>
    %c0_9 = arith.constant 0 : index
    %c0_10 = arith.constant 0 : index
    %20 = vector.load %arg6[%c0_9, %c0_10] : memref<8x1xf32, #tpu.memory_space<vmem>>, vector<8x1xf32>
    tpu.vector_store %arg6[%c0_9, %c0_10], %19 {strides = array<i32>} : memref<8x1xf32, #tpu.memory_space<vmem>>, vector<8x1xf32>,
    %c0_11 = arith.constant 0 : index
    %c0_12 = arith.constant 0 : index
    %21 = vector.load %arg5[%c0_11, %c0_12] : memref<8x1xf32, #tpu.memory_space<vmem>>, vector<8x1xf32>
    tpu.vector_store %arg5[%c0_11, %c0_12], %8 {strides = array<i32>} : memref<8x1xf32, #tpu.memory_space<vmem>>, vector<8x1xf32>,
    %c0_13 = arith.constant 0 : index
    %c0_14 = arith.constant 0 : index
    %22 = vector.load %arg3[%c0_13, %c0_14] : memref<8x1xi32, #tpu.memory_space<vmem>>, vector<8x1xi32>
    %c128_i32 = arith.constant 128 : i32
    %23 = arith.muli %arg1, %c128_i32 : i32
    %24 = vector.broadcast %23 : i32 to vector<8x1xi32>
    %25 = arith.subi %22, %24 : vector<8x1xi32>
    %26 = vector.broadcast %4 : vector<1x128xi32> to vector<8x128xi32>
    %27 = vector.broadcast %25 : vector<8x1xi32> to vector<8x128xi32>
    %28 = arith.cmpi eq, %26, %27 : vector<8x128xi32>
    %cst_15 = arith.constant 0.899999976 : f32
    %cst_16 = arith.constant 3.92156857E-4 : f32
    %29 = vector.broadcast %cst_15 : f32 to vector<8x128xf32>
    %30 = vector.broadcast %cst_16 : f32 to vector<8x128xf32>
    %31 = arith.select %28, %29, %30 : vector<8x128xi1>, vector<8x128xf32>
    %c0_17 = arith.constant 0 : index
    %c0_18 = arith.constant 0 : index
    %32 = vector.load %arg7[%c0_17, %c0_18] : memref<8x1xf32, #tpu.memory_space<vmem>>, vector<8x1xf32>
    %33 = arith.mulf %3, %31 : vector<8x128xf32>
    %cst_19 = arith.constant dense<0.000000e+00> : vector<8xf32>
    %34 = vector.multi_reduction <add>, %33, %cst_19 [1] : vector<8x128xf32> to vector<8xf32>
    %35 = vector.shape_cast %34 : vector<8xf32> to vector<8x1xf32>
    %36 = arith.addf %32, %35 : vector<8x1xf32>
    %c0_20 = arith.constant 0 : index
    %c0_21 = arith.constant 0 : index
    %37 = vector.load %arg7[%c0_20, %c0_21] : memref<8x1xf32, #tpu.memory_space<vmem>>, vector<8x1xf32>
    tpu.vector_store %arg7[%c0_20, %c0_21], %36 {strides = array<i32>} : memref<8x1xf32, #tpu.memory_space<vmem>>, vector<8x1xf32>,
    %c1_i32 = arith.constant 1 : i32
    %38 = arith.cmpi eq, %arg1, %c1_i32 : i32
    %39 = arith.extui %38 : i1 to i32
    %c0_i32_22 = arith.constant 0 : i32
    %40 = arith.cmpi ne, %39, %c0_i32_22 : i32
    scf.if %40 {
      %c0_23 = arith.constant 0 : index
      %c0_24 = arith.constant 0 : index
      %41 = vector.load %arg5[%c0_23, %c0_24] : memref<8x1xf32, #tpu.memory_space<vmem>>, vector<8x1xf32>
      %c0_25 = arith.constant 0 : index
      %c0_26 = arith.constant 0 : index
      %42 = vector.load %arg6[%c0_25, %c0_26] : memref<8x1xf32, #tpu.memory_space<vmem>>, vector<8x1xf32>
      %43 = math.log %42 : vector<8x1xf32>
      %44 = arith.addf %41, %43 : vector<8x1xf32>
      %c0_27 = arith.constant 0 : index
      %c0_28 = arith.constant 0 : index
      %45 = vector.load %arg7[%c0_27, %c0_28] : memref<8x1xf32, #tpu.memory_space<vmem>>, vector<8x1xf32>
      %46 = arith.subf %44, %45 : vector<8x1xf32>
      %c0_29 = arith.constant 0 : index
      %c0_30 = arith.constant 0 : index
      %47 = vector.load %arg4[%c0_29, %c0_30] : memref<8x1xf32, #tpu.memory_space<vmem>>, vector<8x1xf32>
      tpu.vector_store %arg4[%c0_29, %c0_30], %46 {strides = array<i32>} : memref<8x1xf32, #tpu.memory_space<vmem>>, vector<8x1xf32>,
    } else {
    }
    return
  }
  func.func @transform_0(%arg0: i32, %arg1: i32) -> (i32, i32) {
    %c0_i32 = arith.constant 0 : i32
    return %arg0, %arg1 : i32, i32
  }
  func.func @transform_1(%arg0: i32, %arg1: i32) -> (i32, i32) {
    %c0_i32 = arith.constant 0 : i32
    %c0_i32_0 = arith.constant 0 : i32
    return %arg0, %c0_i32 : i32, i32
  }
  func.func @transform_2(%arg0: i32, %arg1: i32) -> (i32, i32) {
    %c0_i32 = arith.constant 0 : i32
    %c0_i32_0 = arith.constant 0 : i32
    return %arg0, %c0_i32 : i32, i32
  }
}

</mosaic_0001>

<bundles_post_ra>
// kernel: label_smoothing_loss.1
= control target key start
LH: loop header
LB: loop body
LE: loop exit
PB: predicated region body
PF: predicated region fallthrough
CT: control target
= control target key end

     0   :  { %7 = vsyncpa [#allocation6], 0  ;;  %s687_s0 = inlined_call_operand.hbm [shape: f32[16,256], index: 0, kind: input, shape index: {}]   ;;  %s688_s1 = inlined_call_operand.vmem [shape: s32[16,1], index: 1, kind: input, shape index: {}]   ;;  %s689_s2 = inlined_call_operand.vmem [shape: f32[16,1], index: 2, kind: output, shape index: {}]  }
   0x1   :  { %9 = vsyncpa [#allocation6 + $0x1], 0  ;;  %s561_s9 = smov 0   ;;  %s563_s10 = smov 0  }
   0x2   :  { %s565_s11 = smov 0   ;;  %s567_s12 = smov 0  }
   0x3   :  { %s569_s13 = smov 0   ;;  %s571_s14 = smov 0  }
   0x4   :  { %s573_s15 = smov 0   ;;  %s575_s16 = smov 0  }
   0x5 LB: > { %s345_s17 = sadd.s32 4294967295, %s540_s16   ;;  %s24_s18 = sadd.s32 1, %s532_s14  ;;  %s540_s16 = sphi %s575_s16, %s15_s16   ;;  %s536_s15 = sphi %s573_s15, %s698_s15   ;;  %s532_s14 = sphi %s571_s14, %s697_s14   ;;  %s528_s13 = sphi %s569_s13, %s696_s13   ;;  %s524_s12 = sphi %s567_s12, %s695_s12   ;;  %s520_s11 = sphi %s565_s11, %s694_s11   ;;  %s516_s10 = sphi %s563_s10, %s693_s10   ;;  %s512_s9 = sphi %s561_s9, %s692_s9  }
   0x6   : > { %p25_p0 = scmp.ge.s32.totalorder %s24_s18, 2  ;;  %s27_s19 = sadd.s32 1, %s536_s15 }
   0x7   : > { %s36_s20 = sadd.s32 1, %s520_s11  ;;  %p43_p1 = scmp.ne.s32.totalorder %s520_s11, %s516_s10 }
   0x8   : > { %s700_s18 = smov (%p25_p0, %s24_s18), 0  ;;  %s702_s19 = smov (!%p25_p0, %s27_s19), %s536_s15 }
   0x9   : > { %s32_s21 = ssub.s32 %s532_s14, %s700_s18  ;;  %p44_p2 = scmp.eq.s32.totalorder %s540_s16, 0 }
   0xa   : > { %p29_p3 = scmp.ge.s32.totalorder %s702_s19, 2  ;;  %p49_p4 = scmp.ne.s32.totalorder %s516_s10, %s512_s9 }
   0xb   : > { %p612_p5 = por %p44_p2, %p43_p1  ;;  %p50_p6 = scmp.eq.s32.totalorder %s345_s17, 0 }
   0xc   : > { %s704_s19 = smov (%p29_p3, %s702_s19), 0  ;;  %p367_p8 = scmp.lt.s32.totalorder %s540_s16, 4 }
   0xd   : > { %p618_p7 = por %p50_p6, %p49_p4  ;;  %s31_s24 = ssub.s32 %s536_s15, %s704_s19 }
   0xe   : > { %s33_s25 = sor.u32 %s32_s21, %s31_s24  ;;  %s125_s26 = sand.u32 1, %s520_s11  }
   0xf   : > { %p34_p9 = scmp.eq.s32.totalorder %s33_s25, 0  ;;  %s349_s27 = sshll.u32 %s125_s26, 3 }
  0x10   : > { %s350_s28 = sshll.u32 %s536_s15, 1  ;;  %s129_s4 = scalar_lea.vmem [#allocation5], %s349_s27 }
  0x11   : > { %s628_s29 = scalar_select %p34_p9, %s520_s11, %s36_s20  }
  0x12   : > { %s133_s30 = sadd.s32 %s532_s14, %s350_s28  ;;  %s139_s5 = sshll.u32 %s129_s4, 4  ;;  %s140_s5 = int_to_ptr.vmem [resolvable:$true] %s139_s5 }
  0x13   : > { %s351_s3 = sshll.u32 %s133_s30, 3  ;;  %p364_p10 = pnand %p367_p8, %p612_p5 }
  0x14   : > { %s135_s8 = scalar_lea.hbm %s687_s0, %s351_s3  ;;  %p352_p11 = scmp.ge.s32.totalorder %s540_s16, 1 }
  0x15   : > { %s137_s9 = sshll.u32 %s135_s8, 4  ;;  %p151_p12 = scmp.lt.s32.totalorder %s540_s16, 5  ;;  %s138_s9 = int_to_ptr.hbm [resolvable:$true] %s137_s9 }
  0x16   : > { %s126_s17 = scalar_lea.sflag [#allocation6], %s125_s26 }
  0x17   : > { %366 = dma.hbm_to_vmem [thread:$0]  (!%p364_p10), %s138_s9, 128, %s140_s5, %s126_s17  }
  0x18   : > { %p152_p13 = pnand %p352_p11, %p151_p12 }
  0x19   : > { %s157_s20 = sand.u32 (!%p152_p13), 1, %s516_s10  }
  0x1a   : > { %155 = sbr.rel (%p152_p13) target bundleno = 428 (0x1ac), region = 28  ;;  %s353_s21 = sshll.u32 (!%p152_p13), %s157_s20, 3 }
  0x1b   : > { %s158_s24 = scalar_lea.sflag (!%p152_p13), [#allocation6], %s157_s20  ;;  %s161_s25 = scalar_lea.vmem (!%p152_p13), [#allocation5], %s353_s21 }
  0x1f   : > { %507 = dma.done.wait (%p618_p7), %s158_s24, 128  }
  0x20   : > { %509 = vsyncadd (%p618_p7), %s158_s24, 4294967168  ;;  %p186_p0 = scmp.lt.s32.totalorder %s528_s13, 1  ;;  %p356_p1 = scmp.ne.s32.totalorder %s524_s12, 0 }
  0x22   : > { %s706_s13 = smov (!%p186_p0, %s528_s13), 1  ;;  %197 = sbr.rel (%p356_p1) target bundleno = 43 (0x2b), region = 36 }
  0x23   : > { %s354_s22 = sshll.u32 %s706_s13, 3 }
  0x24   : > { %s189_s28 = scalar_lea.vmem %s688_s1, %s354_s22  ;;  %s653_s4 = scalar_lea.vmem %s689_s2, %s354_s22 }
  0x27   : > { %vm198_vm0 = vcmask 7168   ;;  %v542_v0 = vmov -inf   ;;  %v543_v1 = vmov 0.0  }
  0x28   : > { %199 = vst.msk [vmem:[#allocation2] sm:$0xff] %vm198_vm0, %v542_v0 }
  0x29   : > { %200 = vst.msk [vmem:[#allocation3] sm:$0xff] %vm198_vm0, %v543_v1 }
  0x2a   : > { %201 = vst.msk [vmem:[#allocation4] sm:$0xff] %vm198_vm0, %v543_v1 }
  0x2b PF: > { %v202_v2 = vld [vmem:[%s161_s25] sm:$0xff]  ;;  %v544_v3 = vmov 0   ;;  %s357_s13 = sshll.u32 %s524_s12, 7  ;;  %vm225_vm1 = vcmask 7168   ;;  %v203_v11 = vlaneseq  ;;  %v545_v14 = vmov 0.00039215686  }
  0x2c   : > { %205 = vmax.xlane.f32.xlu0 %v202_v2  ;;  %437 = vset.pattern.permute.xlu1 %v544_v3  ;;  %v228_v4 = vld [vmem:[%s189_s28] sm:$0xff]  ;;  %v230_v5 = vstv %s357_s13  ;;  %p358_p2 = scmp.ne.s32.totalorder %s524_s12, 1 }
  0x2d   : > { %436 = vset.pattern.permute.xlu0 %v544_v3  ;;  %v231_v6 = vsub.s32 %v228_v4, %v230_v5  ;;  %v204_v12 = vand.u32 127, %v203_v11 }
  0x2f   : > { %233 = vperm.xlu1 %437, %v231_v6   ;;  %v207_v7 = vld [vmem:[#allocation2] sm:$0xff] }
  0x30   : > { %v212_v26 = vld [vmem:[#allocation3] sm:$0xff] }
  0x31   : > { %v237_v21 = vld [vmem:[#allocation4] sm:$0xff] }
  0x9f   : > { %v206_v8 = vpop.xlane.xlu0 %205 }
  0xa0   : > { %v208_v9 = vmax.f32 %v207_v7, %v206_v8 }
  0xa1   : > { %v234_v13 = vpop.permute.xlu1 %233 }
  0xa2   : > { %v209_v10 = vsub.f32 %v207_v7, %v208_v9  ;;  %227 = vst.msk [vmem:[#allocation2] sm:$0xff] %vm225_vm1, %v208_v9  ;;  %216 = vperm.xlu0 %436, %v208_v9   ;;  %vm235_vm2 = vcmp.eq.s32.totalorder %v204_v12, %v234_v13 }
  0xa3   : > { %v236_v15 = vsel %vm235_vm2, 0.9, %v545_v14 }
  0xa4   : > { %v238_v16 = vmul.f32 %v236_v15, %v202_v2  ;;  %v210_v24 = vmul.f32 1.442695, %v209_v10 }
  0xa6   : > { %239 = vadd.xlane.f32.xlu2 %v238_v16 }
 0x114   : > { %v217_v17 = vpop.permute.xlu0 %216 }
 0x115   : > { %v219_v18 = vsub.f32 %v202_v2, %v217_v17 }
 0x117   : > { %v220_v19 = vmul.f32 1.442695, %v219_v18 }
 0x119   : > { %438 = vpow2.f32 %v220_v19  ;;  %v240_v22 = vpop.xlane.xlu2 %239 }
 0x11a   : > { %v241_v23 = vadd.f32 %v240_v22, %v237_v21  ;;  %440 = vpow2.f32 %v210_v24 }
 0x11c   : > { %242 = vst.msk [vmem:[#allocation4] sm:$0xff] %vm225_vm1, %v241_v23 }
 0x11f   : > { %v439_v20 = vpop.eup %438 }
 0x120   : > { %222 = vadd.xlane.f32.xlu1 %v439_v20  ;;  %v441_v25 = vpop.eup %440 }
 0x121   : > { %v213_v27 = vmul.f32 %v441_v25, %v212_v26 }
 0x192   : > { %246 = sbr.rel (%p358_p2) target bundleno = 428 (0x1ac), region = 40 }
 0x193   : > { %v223_v28 = vpop.xlane.xlu1 %222 }
 0x194   : > { %v224_v29 = vadd.f32 %v223_v28, %v213_v27 }
 0x196   : > { %226 = vst.msk [vmem:[#allocation3] sm:$0xff] %vm225_vm1, %v224_v29 }
 0x197   : > { %v247_v32 = vld [vmem:[#allocation2] sm:$0xff]  ;;  %v252_v34 = vld [vmem:[#allocation4] sm:$0xff] }
 0x19d   : > { %v248_v30 = vld [vmem:[#allocation3] sm:$0xff] }
 0x19e   : > { %442 = vlog2.f32 %v248_v30 }
 0x1a4   : > { %v443_v31 = vpop.eup %442 }
 0x1a5   : > { %v250_v33 = vmul.f32 0.6931472, %v443_v31 }
 0x1a7   : > { %v251_v35 = vadd.f32 %v250_v33, %v247_v32 }
 0x1a9   : > { %v253_v36 = vsub.f32 %v251_v35, %v252_v34 }
 0x1ab   : > { %254 = vst.msk [vmem:[%s653_s4] sm:$0xff] %vm225_vm1, %v253_v36 }
 0x1ac PF: > { %s15_s16 = sadd.s32 1, %s540_s16   ;;  %s692_s9 = smov %s516_s10 }
 0x1ad   : > { %p12_p3 = scmp.ge.s32.totalorder %s15_s16, 6   ;;  %s693_s10 = smov %s520_s11 }
 0x1ae   : > { %s694_s11 = smov %s628_s29  ;;  %s695_s12 = smov %s532_s14 }
 0x1af   : > { %s696_s13 = smov %s536_s15  ;;  %s697_s14 = smov %s700_s18 }
 0x1b0   : > { %s698_s15 = smov %s704_s19  ;;  %14 = sbr.rel (!%p12_p3) target bundleno = 5 (0x5), region = 79 }
 0x1b5   :  { %274 = vsyncpa [#allocation6], 1 }
 0x1b6   :  { %276 = vsyncpa [#allocation6 + $0x1], 1 }

</bundles_post_ra>
